<compile_context>
chip_gen: v7x
topology: tpu7x:2x2x1
jax: 0.10.0
libtpu: 0.0.40
codegen_flags: <defaults>
</compile_context>

<pallas_src>
import functools

import jax
import jax.numpy as jnp
from jax.experimental import pallas as pl
from jax.experimental.pallas import tpu as pltpu


def _round_up(x, m):
    return (x + m - 1) // m * m


def _mlp_kernel(x_ref, w1_ref, b1_ref, w2_ref, b2_ref, o_ref):
    """One (row_tile, H) tile of:  silu(x @ w1 + b1) @ w2 + b2."""
    x = x_ref[...]
    if x.dtype != jnp.float32:
        x = x.astype(jnp.float32)

    # Layer 1 (tiny K=D_in contraction) on the MXU, f32 accumulate.
    h = jnp.dot(x, w1_ref[...], preferred_element_type=jnp.float32) + b1_ref[...]

    # SiLU = h * sigmoid(h) = 0.5 * h * (1 + tanh(h/2)): one EUP transcendental.
    h = 0.5 * h * (1.0 + jnp.tanh(0.5 * h))

    # Layer 2 on the MXU; h is cast to w2's dtype (bf16 by default), accumulate
    # in f32, add the f32 bias.
    out = jnp.dot(h.astype(w2_ref.dtype), w2_ref[...],
                  preferred_element_type=jnp.float32) + b2_ref[...]
    o_ref[...] = out.astype(o_ref.dtype)


@functools.partial(
    jax.jit, static_argnames=("row_tile", "layer2_dtype", "out_dtype"))
def coordinate_positional_encoder(coords, w1, b1, w2, b2, *, row_tile=1024,
                                  layer2_dtype=jnp.bfloat16, out_dtype=None):
    """coords: (B, S, D_in) -> (B, S, H) = silu(coords @ w1 + b1) @ w2 + b2."""
    B, S, D_in = coords.shape
    H = w1.shape[1]
    assert w1.shape == (D_in, H) and b1.shape == (H,)
    assert w2.shape == (H, H) and b2.shape == (H,)

    M = B * S
    out_dtype = out_dtype or coords.dtype

    # Row tile: big enough to amortize per-step pipeline overhead, small enough
    # that the grid has >= 2 steps whenever M > 8 (both v7x TensorCores busy).
    tile_cap = _round_up(max(row_tile, 8), 8)
    half = _round_up(max(pl.cdiv(M, 2), 8), 8)
    tile = min(tile_cap, half)
    Mp = _round_up(M, tile)
    grid = (Mp // tile,)

    # Parameter prep (tiny; no hidden-dim padding needed — blocks use full H).
    x2d = coords.reshape(M, D_in).astype(jnp.float32)
    if Mp != M:
        x2d = jnp.pad(x2d, ((0, Mp - M), (0, 0)))
    w1f = w1.astype(jnp.float32)
    b1f = b1.reshape(1, H).astype(jnp.float32)
    w2c = w2.astype(layer2_dtype)          # only layer 2 is quantized
    b2f = b2.reshape(1, H).astype(jnp.float32)

    # Explicit VMEM budget: ~1.5x the real footprint, capped under v7x's
    # 64 MiB physical VMEM (48 MiB), no artificial 32 MiB floor.
    f32b = 4
    l2b = jnp.dtype(layer2_dtype).itemsize
    outb = jnp.dtype(out_dtype).itemsize
    est = (2 * tile * D_in * f32b            # x tile (double-buffered)
           + 2 * tile * H * outb             # out tile (double-buffered)
           + 2 * (D_in * H + 2 * H) * f32b   # w1, b1, b2 (resident, dbl-buf)
           + 2 * H * H * l2b                 # w2 (resident, dbl-buf)
           + tile * H * (2 * f32b + l2b))    # f32 h, f32 acc, low-prec h copy
    vmem_limit = int(min(max(int(1.5 * est), 8 << 20), 48 << 20))

    out2d = pl.pallas_call(
        _mlp_kernel,
        out_shape=jax.ShapeDtypeStruct((Mp, H), out_dtype),
        grid_spec=pltpu.PrefetchScalarGridSpec(
            num_scalar_prefetch=0,
            grid=grid,
            in_specs=[
                pl.BlockSpec((tile, D_in), lambda i: (i, 0)),  # x row tile
                pl.BlockSpec((D_in, H), lambda i: (0, 0)),     # w1 (resident)
                pl.BlockSpec((1, H), lambda i: (0, 0)),         # b1 (resident)
                pl.BlockSpec((H, H), lambda i: (0, 0)),          # w2 (resident)
                pl.BlockSpec((1, H), lambda i: (0, 0)),          # b2 (resident)
            ],
            out_specs=pl.BlockSpec((tile, H), lambda i: (i, 0)),
        ),
        compiler_params=pltpu.CompilerParams(
            dimension_semantics=("parallel",),
            vmem_limit_bytes=vmem_limit,
        ),
    )(x2d, w1f, b1f, w2c, b2f)

    if Mp != M:
        out2d = out2d[:M]
    return out2d.reshape(B, S, H)


def _init_params(key, input_dim, hidden_size):
    """Deterministic init mimicking nn.Linear defaults (uniform +-1/sqrt(fan_in))."""
    k1, k2, k3, k4 = jax.random.split(key, 4)
    bound1 = 1.0 / (input_dim ** 0.5)
    bound2 = 1.0 / (hidden_size ** 0.5)
    w1 = jax.random.uniform(k1, (input_dim, hidden_size), jnp.float32, -bound1, bound1)
    b1 = jax.random.uniform(k2, (hidden_size,), jnp.float32, -bound1, bound1)
    w2 = jax.random.uniform(k3, (hidden_size, hidden_size), jnp.float32, -bound2, bound2)
    b2 = jax.random.uniform(k4, (hidden_size,), jnp.float32, -bound2, bound2)
    return w1, b1, w2, b2


def _ref(coords, w1, b1, w2, b2):
    h = coords @ w1 + b1
    h = h * jax.nn.sigmoid(h)
    return h @ w2 + b2


if __name__ == "__main__":
    key = jax.random.PRNGKey(0)
    k_coords, k_params, k_coords2 = jax.random.split(key, 3)

    batch, seq, input_dim, hidden_size = 2, 8, 3, 32
    coords = jax.random.normal(k_coords, (batch, seq, input_dim), jnp.float32)
    w1, b1, w2, b2 = _init_params(k_params, input_dim, hidden_size)
    expected = _ref(coords, w1, b1, w2, b2)

    # Exact path: layer 2 kept in f32 -> tight match against the reference.
    out_exact = jax.block_until_ready(
        coordinate_positional_encoder(coords, w1, b1, w2, b2,
                                      layer2_dtype=jnp.float32))
    assert out_exact.shape == (batch, seq, hidden_size)
    assert jnp.allclose(out_exact, expected, atol=1e-4, rtol=1e-4)

    # Default fast path: bf16 layer-2 matmul (f32 accumulate).
    out_fast = jax.block_until_ready(
        coordinate_positional_encoder(coords, w1, b1, w2, b2))
    assert out_fast.shape == (batch, seq, hidden_size)
    assert jnp.allclose(out_fast, expected, atol=2e-2, rtol=2e-2)

    # Ragged M (not a multiple of the row tile) + multi-step grid.
    coords2 = jax.random.normal(k_coords2, (3, 50, input_dim), jnp.float32)
    expected2 = _ref(coords2, w1, b1, w2, b2)
    out2 = jax.block_until_ready(
        coordinate_positional_encoder(coords2, w1, b1, w2, b2, row_tile=64))
    assert out2.shape == (3, 50, hidden_size)
    assert jnp.allclose(out2, expected2, atol=2e-2, rtol=2e-2)

    print("KERNEL_OK")
</pallas_src>

<mosaic_0001>
module attributes {stable_mosaic.version = 11 : i64} {
  func.func @_mlp_kernel(%arg0: i32, %arg1: memref<8x3xf32, #tpu.memory_space<vmem>>, %arg2: memref<3x32xf32, #tpu.memory_space<vmem>>, %arg3: memref<1x32xf32, #tpu.memory_space<vmem>>, %arg4: memref<32x32xf32, #tpu.memory_space<vmem>>, %arg5: memref<1x32xf32, #tpu.memory_space<vmem>>, %arg6: memref<8x32xf32, #tpu.memory_space<vmem>>) attributes {dimension_semantics = [#tpu.dimension_semantics<parallel>], iteration_bounds = array<i64: 2>, scalar_prefetch = 0 : i64, scratch_operands = 0 : i64, tpu.core_type = #tpu.core_type<tc>, window_params = [{transform_indices = @transform_0, window_bounds = array<i64: 8, 3>}, {pipeline_mode = #tpu.pipeline_mode<synchronous>, transform_indices = @transform_1, window_bounds = array<i64: 3, 32>}, {pipeline_mode = #tpu.pipeline_mode<synchronous>, transform_indices = @transform_2, window_bounds = array<i64: 1, 32>}, {pipeline_mode = #tpu.pipeline_mode<synchronous>, transform_indices = @transform_3, window_bounds = array<i64: 32, 32>}, {pipeline_mode = #tpu.pipeline_mode<synchronous>, transform_indices = @transform_4, window_bounds = array<i64: 1, 32>}, {transform_indices = @transform_5, window_bounds = array<i64: 8, 32>}]} {
    %c0 = arith.constant 0 : index
    %c0_0 = arith.constant 0 : index
    %0 = vector.load %arg1[%c0, %c0_0] : memref<8x3xf32, #tpu.memory_space<vmem>>, vector<8x3xf32>
    %c0_1 = arith.constant 0 : index
    %c0_2 = arith.constant 0 : index
    %1 = vector.load %arg2[%c0_1, %c0_2] : memref<3x32xf32, #tpu.memory_space<vmem>>, vector<3x32xf32>
    %cst = arith.constant dense<0.000000e+00> : vector<8x32xf32>
    %2 = tpu.matmul %0, %1, %cst {dimension_numbers = #tpu.dot_dimension_numbers<[1], [0], [0], [1], [0, 0, 1, 1], [], []>} : vector<8x3xf32>, vector<3x32xf32>, vector<8x32xf32> -> vector<8x32xf32>
    %c0_3 = arith.constant 0 : index
    %c0_4 = arith.constant 0 : index
    %3 = vector.load %arg3[%c0_3, %c0_4] : memref<1x32xf32, #tpu.memory_space<vmem>>, vector<1x32xf32>
    %4 = vector.broadcast %3 : vector<1x32xf32> to vector<8x32xf32>
    %5 = arith.addf %2, %4 : vector<8x32xf32>
    %cst_5 = arith.constant 5.000000e-01 : f32
    %6 = vector.broadcast %cst_5 : f32 to vector<8x32xf32>
    %7 = arith.mulf %6, %5 : vector<8x32xf32>
    %cst_6 = arith.constant 5.000000e-01 : f32
    %8 = vector.broadcast %cst_6 : f32 to vector<8x32xf32>
    %9 = arith.mulf %8, %5 : vector<8x32xf32>
    %10 = math.tanh %9 : vector<8x32xf32>
    %cst_7 = arith.constant 1.000000e+00 : f32
    %11 = vector.broadcast %cst_7 : f32 to vector<8x32xf32>
    %12 = arith.addf %11, %10 : vector<8x32xf32>
    %13 = arith.mulf %7, %12 : vector<8x32xf32>
    %c0_8 = arith.constant 0 : index
    %c0_9 = arith.constant 0 : index
    %14 = vector.load %arg4[%c0_8, %c0_9] : memref<32x32xf32, #tpu.memory_space<vmem>>, vector<32x32xf32>
    %cst_10 = arith.constant dense<0.000000e+00> : vector<8x32xf32>
    %15 = tpu.matmul %13, %14, %cst_10 {dimension_numbers = #tpu.dot_dimension_numbers<[1], [0], [0], [1], [0, 0, 1, 1], [], []>} : vector<8x32xf32>, vector<32x32xf32>, vector<8x32xf32> -> vector<8x32xf32>
    %c0_11 = arith.constant 0 : index
    %c0_12 = arith.constant 0 : index
    %16 = vector.load %arg5[%c0_11, %c0_12] : memref<1x32xf32, #tpu.memory_space<vmem>>, vector<1x32xf32>
    %17 = vector.broadcast %16 : vector<1x32xf32> to vector<8x32xf32>
    %18 = arith.addf %15, %17 : vector<8x32xf32>
    %c0_13 = arith.constant 0 : index
    %c0_14 = arith.constant 0 : index
    %19 = vector.load %arg6[%c0_13, %c0_14] : memref<8x32xf32, #tpu.memory_space<vmem>>, vector<8x32xf32>
    tpu.vector_store %arg6[%c0_13, %c0_14], %18 {strides = array<i32>} : memref<8x32xf32, #tpu.memory_space<vmem>>, vector<8x32xf32>,
    return
  }
  func.func @transform_0(%arg0: i32) -> (i32, i32) {
    %c0_i32 = arith.constant 0 : i32
    %c0_i32_0 = arith.constant 0 : i32
    return %arg0, %c0_i32 : i32, i32
  }
  func.func @transform_1(%arg0: i32) -> (i32, i32) {
    %c0_i32 = arith.constant 0 : i32
    %c0_i32_0 = arith.constant 0 : i32
    %c0_i32_1 = arith.constant 0 : i32
    return %c0_i32, %c0_i32_0 : i32, i32
  }
  func.func @transform_2(%arg0: i32) -> (i32, i32) {
    %c0_i32 = arith.constant 0 : i32
    %c0_i32_0 = arith.constant 0 : i32
    %c0_i32_1 = arith.constant 0 : i32
    return %c0_i32, %c0_i32_0 : i32, i32
  }
  func.func @transform_3(%arg0: i32) -> (i32, i32) {
    %c0_i32 = arith.constant 0 : i32
    %c0_i32_0 = arith.constant 0 : i32
    %c0_i32_1 = arith.constant 0 : i32
    return %c0_i32, %c0_i32_0 : i32, i32
  }
  func.func @transform_4(%arg0: i32) -> (i32, i32) {
    %c0_i32 = arith.constant 0 : i32
    %c0_i32_0 = arith.constant 0 : i32
    %c0_i32_1 = arith.constant 0 : i32
    return %c0_i32, %c0_i32_0 : i32, i32
  }
  func.func @transform_5(%arg0: i32) -> (i32, i32) {
    %c0_i32 = arith.constant 0 : i32
    %c0_i32_0 = arith.constant 0 : i32
    return %arg0, %c0_i32 : i32, i32
  }
}

</mosaic_0001>

<bundles_post_ra>
// kernel: coordinate_positional_encoder.1
= control target key start
LH: loop header
LB: loop body
LE: loop exit
PB: predicated region body
PF: predicated region fallthrough
CT: control target
= control target key end

     0   :  { %10 = vsyncpa [#allocation3], 0  ;;  %s777_s0 = inlined_call_operand.vmem [shape: f32[16,3], index: 0, kind: input, shape index: {}]   ;;  %s778_s1 = inlined_call_operand.vmem [shape: f32[3,32], index: 1, kind: input, shape index: {}]   ;;  %s779_s2 = inlined_call_operand.vmem [shape: f32[1,32], index: 2, kind: input, shape index: {}]   ;;  %s780_s3 = inlined_call_operand.vmem [shape: f32[32,32], index: 3, kind: input, shape index: {}]   ;;  %s781_s4 = inlined_call_operand.vmem [shape: f32[1,32], index: 4, kind: input, shape index: {}]   ;;  %s782_s5 = inlined_call_operand.hbm [shape: f32[16,32], index: 5, kind: output, shape index: {}]  }
   0x1   :  { %12 = vsyncpa [#allocation3 + $0x1], 0  ;;  %s656_s18 = smov 0   ;;  %s658_s19 = smov 0  }
   0x2   :  { %s660_s20 = smov 0   ;;  %s662_s21 = smov 0  }
   0x3 LB: > { %s677_s22 = sadd.s32 4294967295, %s620_s21   ;;  %s470_s23 = sadd.s32 4294967294, %s620_s21   ;;  %s620_s21 = sphi %s662_s21, %s788_s21   ;;  %s616_s20 = sphi %s660_s20, %s787_s20   ;;  %s612_s19 = sphi %s658_s19, %s786_s19   ;;  %s608_s18 = sphi %s656_s18, %s785_s18  }
   0x4   : > { %s681_s24 = sadd.s32 1, %s620_s21   ;;  %s135_s25 = sadd.s32 1, %s616_s20 }
   0x5   : > { %s132_s26 = ssub.s32 %s620_s21, %s681_s24  ;;  %p145_p0 = scmp.ne.s32.totalorder %s616_s20, %s612_s19 }
   0x6   : > { %p133_p1 = scmp.eq.s32.totalorder %s132_s26, 0  ;;  %p146_p2 = scmp.eq.s32.totalorder %s677_s22, 1 }
   0x7   : > { %p151_p3 = scmp.ne.s32.totalorder %s612_s19, %s608_s18  ;;  %p152_p4 = scmp.eq.s32.totalorder %s470_s23, 1 }
   0x8   : > { %s692_s27 = scalar_select %p133_p1, %s616_s20, %s135_s25  }
   0x9   : > { %p694_p5 = por %p146_p2, %p145_p0  ;;  %p698_p6 = por %p152_p4, %p151_p3 }
   0xa   : > { %p473_p7 = scmp.ge.s32.totalorder %s620_s21, 1  ;;  %p189_p8 = scmp.lt.s32.totalorder %s620_s21, 3 }
   0xc   : > { %p190_p9 = pnand %p473_p7, %p189_p8 }
   0xd   : > { %v221_v0 = vld [vmem:[%s778_s1] sm:$0x7] (!%p190_p9)  ;;  %vm233_vm0 = vcmask (!%p190_p9), 1042432   ;;  %p216_p10 = scmp.lt.s32.totalorder (!%p190_p9), %s677_s22, 1  ;;  %v622_v1 = vmov (!%p190_p9), 0.0   ;;  %vm623_vm1 = vmmov (!%p190_p9), 0  }
   0xe   : > { %193 = sbr.rel (%p190_p9) target bundleno = 485 (0x1e5), region = 40  ;;  %492 = vmatprep.subr.mxu0 (!%p190_p9), %v622_v1  ;;  %494 = vmatprep.mubr.msk.f32.mxu0 (!%p190_p9), %vm623_vm1, %v622_v1  ;;  %vm229_vm2 = vcmask (!%p190_p9), 23552   ;;  %v311_v3 = vld [vmem:[%s780_s3] sm:$0xff] (!%p190_p9)  ;;  %v312_v4 = vld [vmem:[%s780_s3 + $0x8] sm:$0xff] (!%p190_p9)  ;;  %v624_v6 = vmov (!%p190_p9), 0.0|0.0   ;;  %v313_v7 = vld [vmem:[%s780_s3 + $0x10] sm:$0xff] (!%p190_p9) }
   0xf   : > { %493 = vmatpush3.msk.msra.mxu0 (!%p190_p9), %vm233_vm0, %v221_v0  ;;  %505 = vmatprep.mubr.msk.f32.mxu1 (!%p190_p9), %vm623_vm1, %v622_v1  ;;  %v509_v5 = vpack.c.bf16 (!%p190_p9), %v312_v4, %v311_v3  ;;  %v314_v8 = vld [vmem:[%s780_s3 + $0x18] sm:$0xff] (!%p190_p9)  ;;  %v476_v10 = vld [vmem:[%s779_s2] ss:$0 sm:$0xff] (!%p190_p9)  ;;  %vm322_vm3 = vcmask (!%p190_p9), 261120   ;;  %s213_s6 = sand.u32 (!%p190_p9), 1, %s612_s19   ;;  %s482_s10 = sshll.u32 (!%p190_p9), %s677_s22, 7 }
  0x10   : > { %508 = vmatprep.subr.bf16.mxu1 (!%p190_p9), %v624_v6  ;;  %v512_v9 = vpack.c.bf16 (!%p190_p9), %v314_v8, %v313_v7  ;;  %v479_v18 = vld [vmem:[%s781_s4] ss:$0 sm:$0xff] (!%p190_p9)  ;;  %s735_s15 = scalar_lea.hbm (!%p190_p9), %s782_s5, %s482_s10  ;;  %s398_s16 = scalar_lea.sflag (!%p190_p9), [#allocation3], %s213_s6 }
  0x11   : > { %510 = vmatpush3.bf16.msra.mxu1 (!%p190_p9), %v509_v5 }
  0x12   : > { %511 = vmatprep.subr.bf16.mxu1 (!%p190_p9), %v624_v6 }
  0x15   : > { %s217_s7 = scalar_select %p216_p10, %s677_s22, 1  ;;  %513 = vmatpush3.bf16.msra.mxu1 %v512_v9 }
  0x16   : > { %s625_s22 = smov [#allocation2]  }
  0x17   : > { %s475_s8 = sshll.u32 %s217_s7, 3  ;;  %s474_s7 = sshll.u32 %s213_s6, 3 }
  0x18   : > { %s219_s11 = scalar_lea.vmem %s777_s0, %s475_s8  ;;  %s562_s23 = sshll.u32 %s625_s22, 4  ;;  %s563_s23 = int_to_ptr.vmem [resolvable:$false] %s562_s23 }
  0x19   : > { %v220_v2 = vld [vmem:[%s219_s11] sm:$0xff]  ;;  %s215_s11 = scalar_lea.vmem [#allocation2], %s474_s7  ;;  %s564_s25 = scalar_lea.vmem %s563_s23, 256 }
  0x1a   : > { %495 = vmatmul.mubr.msk.f32.vlgmr.msra.gmra.mrb[0].mxu0 %vm229_vm2, %v220_v2  ;;  %s411_s12 = sshll.u32 %s215_s11, 4  ;;  %s737_s12 = int_to_ptr.vmem [resolvable:$true] %s411_s12 }
  0x1b   : > { %s558_s17 = scalar_lea.vmem %s737_s12, 128  ;;  %p565_p0 = scmp.lt.s32.totalorder %s737_s12, %s563_s23 }
  0x1c   : > { %p559_p11 = scmp.ne.s32.totalorder %s737_s12, %s558_s17  ;;  %p566_p1 = scmp.lt.s32.totalorder %s564_s25, %s558_s17 }
  0x1e   : > { %p560_p12 = pnand %p559_p11, %p694_p5  ;;  %p567_p2 = por %p566_p1, %p565_p0 }
  0x20   : > { %p561_p13 = pneg %p560_p12 }
  0x22   : > { %p568_p3 = pnand %p567_p2, %p561_p13 }
  0xed   : > { %v303_v11 = vpop.f32.mrb[0].mxu0 }
  0xee   : > { %v304_v12 = vadd.f32 %v476_v10, %v303_v11  ;;  %v496_v13 = vpop.f32.mrb[1].mxu0 }
  0xf0   : > { %v307_v14 = vmul.f32 0.5, %v304_v12 }
  0xf2   : > { %556 = vtanh.f32 %v307_v14 }
  0xfc   : > { %v557_v15 = vpop.eup %556 }
  0xfd   : > { %v309_v16 = vadd.f32 1.0, %v557_v15 }
  0xff   : > { %v310_v17 = vmul.f32 %v309_v16, %v307_v14 }
 0x101   : > { %506 = vmatmul.mubr.msk.f32.vlgmr.msra.gmra.mrb[0].mxu1 %vm322_vm3, %v310_v17 }
 0x1d4   : > { %v392_v19 = vpop.f32.mrb[0].mxu1 }
 0x1d5   : > { %v393_v20 = vadd.f32 %v479_v18, %v392_v19  ;;  %v507_v21 = vpop.f32.mrb[1].mxu1 }
 0x1d7   : > { %396 = vst.msk [vmem:[%s215_s11] sm:$0xff] %vm322_vm3, %v393_v20 }
 0x1d8   : > { %571 = shalt.err (!%p568_p3)
}
 0x1d9   : > { %s572_s26 = scalar_lea.hbm %s735_s15, 128  ;;  %s576_s7 = scalar_lea.hbm %s782_s5, 256 }
 0x1da   : > { %p573_p4 = scmp.ne.s32.totalorder %s735_s15, %s572_s26  ;;  %p577_p9 = scmp.lt.u32.totalorder %s735_s15, %s782_s5 }
 0x1db   : > { %p578_p10 = scmp.lt.u32.totalorder %s576_s7, %s572_s26  ;;  %p580_p12 = scmp.lt.u32.totalorder %s572_s26, %s735_s15 }
 0x1dc   : > { %p574_p7 = pnand %p573_p4, %p694_p5 }
 0x1dd   : > { %p579_p11 = por %p578_p10, %p577_p9 }
 0x1de   : > { %p575_p8 = pneg %p574_p7 }
 0x1df   : > { %p581_p13 = por %p580_p12, %p579_p11 }
 0x1e1   : > { %p582_p0 = pnand %p581_p13, %p575_p8 }
 0x1e3   : > { %585 = shalt.err (!%p582_p0)
}
 0x1e4   : > { %514 = dma.vmem_to_hbm [thread:$0]  (%p694_p5), %s737_s12, 128, %s735_s15, %s398_s16  }
 0x1e5 PF: > { %p520_p1 = scmp.ge.s32.totalorder %s620_s21, 2  ;;  %s423_s10 = sand.u32 1, %s608_s18  }
 0x1e6   : > { %s424_s11 = scalar_lea.sflag [#allocation3], %s423_s10 }
 0x1e7   : > { %p517_p2 = pnand %p520_p1, %p698_p6 }
 0x1e9   : > { %603 = dma.done.wait (!%p517_p2), %s424_s11, 128  }
 0x1ea   : > { %605 = vsyncadd (!%p517_p2), %s424_s11, 4294967168  ;;  %p15_p3 = scmp.ge.s32.totalorder %s681_s24, 4   ;;  %s785_s18 = smov %s612_s19 }
 0x1eb   : > { %s786_s19 = smov %s616_s20  ;;  %s787_s20 = smov %s692_s27 }
 0x1ec   : > { %s788_s21 = smov %s681_s24  ;;  %17 = sbr.rel (!%p15_p3) target bundleno = 3 (0x3), region = 75 }
 0x1f3   :  { %429 = vsyncpa [#allocation3], 1 }
 0x1f4   :  { %431 = vsyncpa [#allocation3 + $0x1], 1 }

</bundles_post_ra>
